<compile_context>
chip_gen: v5e
topology: v5e:2x2
jax: 0.10.0
libtpu: 0.0.40
codegen_flags: <defaults>
</compile_context>

<pallas_src>
import jax
import jax.numpy as jnp
from jax.experimental import pallas as pl
from jax.experimental.pallas import tpu as pltpu


def nhybf_kernel(x_ref, w1_ref, b1_ref, w2_ref, b2_ref, w3_ref, b3_ref,
                 w4_ref, b4_ref, gi_ref, gu_ref, w5r_ref, wog_ref, bo_ref,
                 out_ref):
    # MLP trunk: 4 MXU matmuls, ReLU on the VPU (dropouts are identity in eval).
    h = jnp.dot(x_ref[...], w1_ref[...],
                preferred_element_type=jnp.float32) + b1_ref[...]
    h = jnp.maximum(h, 0.0)

    h = jnp.dot(h, w2_ref[...], preferred_element_type=jnp.float32) + b2_ref[...]
    h = jnp.maximum(h, 0.0)

    h = jnp.dot(h, w3_ref[...], preferred_element_type=jnp.float32) + b3_ref[...]
    h = jnp.maximum(h, 0.0)

    h = jnp.dot(h, w4_ref[...], preferred_element_type=jnp.float32) + b4_ref[...]
    h = jnp.maximum(h, 0.0)

    # Folded (HybMLP_output_layer -> output_layer) MLP logit, N=1:
    # VPU broadcast-mul + XLU lane reduce instead of a 1-wide MXU matmul.
    mlp_logit = jnp.sum(h * w5r_ref[...], axis=-1, keepdims=True)

    # GMF branch: elementwise product of embeddings, scaled by the output-layer
    # row, then lane-reduced (gmf_dropout is identity in eval).
    gmf_logit = jnp.sum(gi_ref[...] * gu_ref[...] * wog_ref[...],
                        axis=-1, keepdims=True)

    logits = mlp_logit + gmf_logit + bo_ref[0, 0]

    # sigmoid: exp on EUP, reciprocal on EUP (approx) -> no VALU divide
    den = 1.0 + jnp.exp(-logits)
    out_ref[...] = pl.reciprocal(den, approx=True)


def nhybf_forward(params, x1, x2, x3):
    """x1, x2: int32 [B] index vectors; x3: float32 [B, 358] side features."""
    # Embedding lookups (integer gather glue, plain JAX).
    item_vec = jnp.take(params["item_emb"], x1, axis=0)
    user_vec = jnp.take(params["user_emb"], x2, axis=0)
    gmf_item = jnp.take(params["gmf_item_emb"], x1, axis=0)
    gmf_user = jnp.take(params["gmf_user_emb"], x2, axis=0)

    # Single concatenated MLP input -> one matmul in the kernel.
    x_cat = jnp.concatenate([item_vec, user_vec, x3], axis=1)

    # Algebraic fold of w5/b5 into the output layer (no ReLU between them).
    output_size = params["w5"].shape[1]
    wo_mlp = params["wo"][:output_size]          # [output_size, 1]
    wo_gmf = params["wo"][output_size:]          # [d_gmf, 1]
    w5_row = (params["w5"] @ wo_mlp).T           # [1, hidden4]
    wog_row = wo_gmf.T                           # [1, d_gmf]
    bo_fold = params["b5"] @ wo_mlp + params["bo"]   # [1, 1]

    B = x3.shape[0]
    operands = (
        x_cat,
        params["w1"], params["b1"],
        params["w2"], params["b2"],
        params["w3"], params["b3"],
        params["w4"], params["b4"],
        gmf_item, gmf_user,
        w5_row, wog_row,
        bo_fold,
    )

    vmem_spec = pl.BlockSpec(memory_space=pltpu.MemorySpace.VMEM)
    smem_spec = pl.BlockSpec(memory_space=pltpu.MemorySpace.SMEM)
    in_specs = [vmem_spec] * (len(operands) - 1) + [smem_spec]

    return pl.pallas_call(
        nhybf_kernel,
        out_shape=jax.ShapeDtypeStruct((B, 1), jnp.float32),
        in_specs=in_specs,
        out_specs=vmem_spec,
    )(*operands)


def init_params(key, num_items, num_users, d_item, d_user, d_gmf,
                hidden=(50, 50, 50, 50), output_size=1):
    ks = jax.random.split(key, 16)
    feat_dim = 358
    scale = 0.1

    def w(k, shape):
        return (scale * jax.random.normal(k, shape)).astype(jnp.float32)

    in1 = d_item + d_user + feat_dim
    return {
        "item_emb": w(ks[0], (num_items, d_item)),
        "user_emb": w(ks[1], (num_users, d_user)),
        "gmf_item_emb": w(ks[2], (num_items, d_gmf)),
        "gmf_user_emb": w(ks[3], (num_users, d_gmf)),
        "w1": w(ks[4], (in1, hidden[0])),
        "b1": w(ks[5], (1, hidden[0])),
        "w2": w(ks[6], (hidden[0], hidden[1])),
        "b2": w(ks[7], (1, hidden[1])),
        "w3": w(ks[8], (hidden[1], hidden[2])),
        "b3": w(ks[9], (1, hidden[2])),
        "w4": w(ks[11], (hidden[2], hidden[3])),
        "b4": w(ks[12], (1, hidden[3])),
        "w5": w(ks[13], (hidden[3], output_size)),
        "b5": w(ks[14], (1, output_size)),
        "wo": w(ks[10], (output_size + d_gmf, 1)),
        "bo": w(ks[15], (1, 1)),
    }


if __name__ == "__main__":
    key = jax.random.PRNGKey(0)
    num_items, num_users = 64, 32
    d_item, d_user, d_gmf = 16, 16, 8
    B = 8

    pkey, k1, k2, k3 = jax.random.split(key, 4)
    params = init_params(pkey, num_items, num_users, d_item, d_user, d_gmf)

    x1 = jax.random.randint(k1, (B,), 0, num_items, dtype=jnp.int32)
    x2 = jax.random.randint(k2, (B,), 0, num_users, dtype=jnp.int32)
    x3 = jax.random.normal(k3, (B, 358), dtype=jnp.float32)

    out = nhybf_forward(params, x1, x2, x3)
    out = jax.block_until_ready(out)

    # sanity: pure-JAX reference of the same forward (eval mode, dropouts = id)
    item_v = params["item_emb"][x1]
    user_v = params["user_emb"][x2]
    cat = jnp.concatenate([item_v, user_v, x3], axis=1)
    h = jnp.maximum(cat @ params["w1"] + params["b1"], 0.0)
    h = jnp.maximum(h @ params["w2"] + params["b2"], 0.0)
    h = jnp.maximum(h @ params["w3"] + params["b3"], 0.0)
    h = jnp.maximum(h @ params["w4"] + params["b4"], 0.0)
    mlp_out = h @ params["w5"] + params["b5"]
    gmf = params["gmf_item_emb"][x1] * params["gmf_user_emb"][x2]
    ref = jax.nn.sigmoid(
        jnp.concatenate([mlp_out, gmf], axis=1) @ params["wo"] + params["bo"])

    assert out.shape == (B, 1)
    # approx=True EUP reciprocal -> allow ~1e-4 absolute error on a (0,1) output
    assert jnp.allclose(out, ref, atol=2e-3, rtol=2e-3)
    print("KERNEL_OK")
</pallas_src>

<mosaic_0001>
module attributes {stable_mosaic.version = 11 : i64} {
  func.func @nhybf_kernel(%arg0: memref<8x390xf32, #tpu.memory_space<vmem>>, %arg1: memref<390x50xf32, #tpu.memory_space<vmem>>, %arg2: memref<1x50xf32, #tpu.memory_space<vmem>>, %arg3: memref<50x50xf32, #tpu.memory_space<vmem>>, %arg4: memref<1x50xf32, #tpu.memory_space<vmem>>, %arg5: memref<50x50xf32, #tpu.memory_space<vmem>>, %arg6: memref<1x50xf32, #tpu.memory_space<vmem>>, %arg7: memref<50x50xf32, #tpu.memory_space<vmem>>, %arg8: memref<1x50xf32, #tpu.memory_space<vmem>>, %arg9: memref<8x8xf32, #tpu.memory_space<vmem>>, %arg10: memref<8x8xf32, #tpu.memory_space<vmem>>, %arg11: memref<1x50xf32, #tpu.memory_space<vmem>>, %arg12: memref<1x8xf32, #tpu.memory_space<vmem>>, %arg13: memref<1x1xf32, #tpu.memory_space<smem>>, %arg14: memref<8x1xf32, #tpu.memory_space<vmem>>) attributes {dimension_semantics = [], scalar_prefetch = 0 : i64, scratch_operands = 0 : i64, tpu.core_type = #tpu.core_type<tc>} {
    %c0 = arith.constant 0 : index
    %c0_0 = arith.constant 0 : index
    %0 = vector.load %arg0[%c0, %c0_0] : memref<8x390xf32, #tpu.memory_space<vmem>>, vector<8x390xf32>
    %c0_1 = arith.constant 0 : index
    %c0_2 = arith.constant 0 : index
    %1 = vector.load %arg1[%c0_1, %c0_2] : memref<390x50xf32, #tpu.memory_space<vmem>>, vector<390x50xf32>
    %cst = arith.constant dense<0.000000e+00> : vector<8x50xf32>
    %2 = tpu.matmul %0, %1, %cst {dimension_numbers = #tpu.dot_dimension_numbers<[1], [0], [0], [1], [0, 0, 1, 1], [], []>} : vector<8x390xf32>, vector<390x50xf32>, vector<8x50xf32> -> vector<8x50xf32>
    %c0_3 = arith.constant 0 : index
    %c0_4 = arith.constant 0 : index
    %3 = vector.load %arg2[%c0_3, %c0_4] : memref<1x50xf32, #tpu.memory_space<vmem>>, vector<1x50xf32>
    %4 = vector.broadcast %3 : vector<1x50xf32> to vector<8x50xf32>
    %5 = arith.addf %2, %4 : vector<8x50xf32>
    %cst_5 = arith.constant 0.000000e+00 : f32
    %6 = vector.broadcast %cst_5 : f32 to vector<8x50xf32>
    %7 = arith.maximumf %5, %6 : vector<8x50xf32>
    %c0_6 = arith.constant 0 : index
    %c0_7 = arith.constant 0 : index
    %8 = vector.load %arg3[%c0_6, %c0_7] : memref<50x50xf32, #tpu.memory_space<vmem>>, vector<50x50xf32>
    %cst_8 = arith.constant dense<0.000000e+00> : vector<8x50xf32>
    %9 = tpu.matmul %7, %8, %cst_8 {dimension_numbers = #tpu.dot_dimension_numbers<[1], [0], [0], [1], [0, 0, 1, 1], [], []>} : vector<8x50xf32>, vector<50x50xf32>, vector<8x50xf32> -> vector<8x50xf32>
    %c0_9 = arith.constant 0 : index
    %c0_10 = arith.constant 0 : index
    %10 = vector.load %arg4[%c0_9, %c0_10] : memref<1x50xf32, #tpu.memory_space<vmem>>, vector<1x50xf32>
    %11 = vector.broadcast %10 : vector<1x50xf32> to vector<8x50xf32>
    %12 = arith.addf %9, %11 : vector<8x50xf32>
    %cst_11 = arith.constant 0.000000e+00 : f32
    %13 = vector.broadcast %cst_11 : f32 to vector<8x50xf32>
    %14 = arith.maximumf %12, %13 : vector<8x50xf32>
    %c0_12 = arith.constant 0 : index
    %c0_13 = arith.constant 0 : index
    %15 = vector.load %arg5[%c0_12, %c0_13] : memref<50x50xf32, #tpu.memory_space<vmem>>, vector<50x50xf32>
    %cst_14 = arith.constant dense<0.000000e+00> : vector<8x50xf32>
    %16 = tpu.matmul %14, %15, %cst_14 {dimension_numbers = #tpu.dot_dimension_numbers<[1], [0], [0], [1], [0, 0, 1, 1], [], []>} : vector<8x50xf32>, vector<50x50xf32>, vector<8x50xf32> -> vector<8x50xf32>
    %c0_15 = arith.constant 0 : index
    %c0_16 = arith.constant 0 : index
    %17 = vector.load %arg6[%c0_15, %c0_16] : memref<1x50xf32, #tpu.memory_space<vmem>>, vector<1x50xf32>
    %18 = vector.broadcast %17 : vector<1x50xf32> to vector<8x50xf32>
    %19 = arith.addf %16, %18 : vector<8x50xf32>
    %cst_17 = arith.constant 0.000000e+00 : f32
    %20 = vector.broadcast %cst_17 : f32 to vector<8x50xf32>
    %21 = arith.maximumf %19, %20 : vector<8x50xf32>
    %c0_18 = arith.constant 0 : index
    %c0_19 = arith.constant 0 : index
    %22 = vector.load %arg7[%c0_18, %c0_19] : memref<50x50xf32, #tpu.memory_space<vmem>>, vector<50x50xf32>
    %cst_20 = arith.constant dense<0.000000e+00> : vector<8x50xf32>
    %23 = tpu.matmul %21, %22, %cst_20 {dimension_numbers = #tpu.dot_dimension_numbers<[1], [0], [0], [1], [0, 0, 1, 1], [], []>} : vector<8x50xf32>, vector<50x50xf32>, vector<8x50xf32> -> vector<8x50xf32>
    %c0_21 = arith.constant 0 : index
    %c0_22 = arith.constant 0 : index
    %24 = vector.load %arg8[%c0_21, %c0_22] : memref<1x50xf32, #tpu.memory_space<vmem>>, vector<1x50xf32>
    %25 = vector.broadcast %24 : vector<1x50xf32> to vector<8x50xf32>
    %26 = arith.addf %23, %25 : vector<8x50xf32>
    %cst_23 = arith.constant 0.000000e+00 : f32
    %27 = vector.broadcast %cst_23 : f32 to vector<8x50xf32>
    %28 = arith.maximumf %26, %27 : vector<8x50xf32>
    %c0_24 = arith.constant 0 : index
    %c0_25 = arith.constant 0 : index
    %29 = vector.load %arg11[%c0_24, %c0_25] : memref<1x50xf32, #tpu.memory_space<vmem>>, vector<1x50xf32>
    %30 = vector.broadcast %29 : vector<1x50xf32> to vector<8x50xf32>
    %31 = arith.mulf %28, %30 : vector<8x50xf32>
    %cst_26 = arith.constant dense<0.000000e+00> : vector<8xf32>
    %32 = vector.multi_reduction <add>, %31, %cst_26 [1] : vector<8x50xf32> to vector<8xf32>
    %33 = vector.shape_cast %32 : vector<8xf32> to vector<8x1xf32>
    %c0_27 = arith.constant 0 : index
    %c0_28 = arith.constant 0 : index
    %34 = vector.load %arg9[%c0_27, %c0_28] : memref<8x8xf32, #tpu.memory_space<vmem>>, vector<8x8xf32>
    %c0_29 = arith.constant 0 : index
    %c0_30 = arith.constant 0 : index
    %35 = vector.load %arg10[%c0_29, %c0_30] : memref<8x8xf32, #tpu.memory_space<vmem>>, vector<8x8xf32>
    %36 = arith.mulf %34, %35 : vector<8x8xf32>
    %c0_31 = arith.constant 0 : index
    %c0_32 = arith.constant 0 : index
    %37 = vector.load %arg12[%c0_31, %c0_32] : memref<1x8xf32, #tpu.memory_space<vmem>>, vector<1x8xf32>
    %38 = vector.broadcast %37 : vector<1x8xf32> to vector<8x8xf32>
    %39 = arith.mulf %36, %38 : vector<8x8xf32>
    %cst_33 = arith.constant dense<0.000000e+00> : vector<8xf32>
    %40 = vector.multi_reduction <add>, %39, %cst_33 [1] : vector<8x8xf32> to vector<8xf32>
    %41 = vector.shape_cast %40 : vector<8xf32> to vector<8x1xf32>
    %42 = arith.addf %33, %41 : vector<8x1xf32>
    %c0_34 = arith.constant 0 : index
    %c0_35 = arith.constant 0 : index
    %43 = memref.load %arg13[%c0_34, %c0_35] : memref<1x1xf32, #tpu.memory_space<smem>>
    %44 = vector.broadcast %43 : f32 to vector<8x1xf32>
    %45 = arith.addf %42, %44 : vector<8x1xf32>
    %cst_36 = arith.constant 0.000000e+00 : f32
    %46 = vector.broadcast %cst_36 : f32 to vector<8x1xf32>
    %47 = arith.subf %46, %45 : vector<8x1xf32>
    %48 = math.exp %47 : vector<8x1xf32>
    %cst_37 = arith.constant 1.000000e+00 : f32
    %49 = vector.broadcast %cst_37 : f32 to vector<8x1xf32>
    %50 = arith.addf %49, %48 : vector<8x1xf32>
    %51 = tpu.reciprocal %50 {approx = true} : vector<8x1xf32> -> vector<8x1xf32>
    %c0_38 = arith.constant 0 : index
    %c0_39 = arith.constant 0 : index
    %52 = vector.load %arg14[%c0_38, %c0_39] : memref<8x1xf32, #tpu.memory_space<vmem>>, vector<8x1xf32>
    tpu.vector_store %arg14[%c0_38, %c0_39], %51 {strides = array<i32>} : memref<8x1xf32, #tpu.memory_space<vmem>>, vector<8x1xf32>,
    return
  }
}

</mosaic_0001>

<bundles_post_ra>
// kernel: tpu_custom_call.1
= control target key start
LH: loop header
LB: loop body
LE: loop exit
PB: predicated region body
PF: predicated region fallthrough
CT: control target
= control target key end

     0   :  { %vm109_vm0 = vcmask 1045504   ;;  %vm105_vm1 = vcmask 48128   ;;  %vm209_vm2 = vcmask 1041408   ;;  %vm205_vm3 = vcmask 408576   ;;  %s697_s1 = inlined_call_operand.vmem [shape: f32[390,50], index: 1, kind: input, shape index: {}]   ;;  %s698_s2 = inlined_call_operand.vmem [shape: f32[1,50], index: 2, kind: input, shape index: {}]   ;;  %s699_s0 = inlined_call_operand.vmem [shape: f32[8,390], index: 0, kind: input, shape index: {}]   ;;  %s700_s4 = inlined_call_operand.vmem [shape: f32[1,50], index: 4, kind: input, shape index: {}]   ;;  %s701_s3 = inlined_call_operand.vmem [shape: f32[50,50], index: 3, kind: input, shape index: {}]   ;;  %s702_s5 = inlined_call_operand.vmem [shape: f32[50,50], index: 5, kind: input, shape index: {}]   ;;  %s703_s6 = inlined_call_operand.vmem [shape: f32[1,50], index: 6, kind: input, shape index: {}]   ;;  %s704_s7 = inlined_call_operand.vmem [shape: f32[50,50], index: 7, kind: input, shape index: {}]   ;;  %s705_s8 = inlined_call_operand.vmem [shape: f32[1,50], index: 8, kind: input, shape index: {}]   ;;  %s706_s11 = inlined_call_operand.vmem [shape: f32[1,50], index: 11, kind: input, shape index: {}]   ;;  %s707_s12 = inlined_call_operand.vmem [shape: f32[1,8], index: 12, kind: input, shape index: {}]   ;;  %s708_s9 = inlined_call_operand.vmem [shape: f32[8,8], index: 9, kind: input, shape index: {}]   ;;  %s709_s10 = inlined_call_operand.vmem [shape: f32[8,8], index: 10, kind: input, shape index: {}]   ;;  %s710_s13 = inlined_call_operand.<no memory space> [shape: f32[1,1], index: 13, kind: input, shape index: {}]   ;;  %s711_s14 = inlined_call_operand.vmem [shape: f32[8,1], index: 14, kind: output, shape index: {}]  }
   0x1   :  { %v67_v0 = vld [vmem:[%s697_s1 + $0x78] sm:$0xff]  ;;  %v66_v2 = vld [vmem:[%s697_s1 + $0x70] sm:$0xff]  ;;  %v65_v5 = vld [vmem:[%s697_s1 + $0x68] sm:$0xff]  ;;  %vm326_vm4 = vcmask 64512   ;;  %vm339_vm5 = vcmask 7168  }
   0x2   :  { %v99_v1 = vld [vmem:[%s697_s1 + $0x178] sm:$0xff]  ;;  %113 = vmatpush.msra.mxu0 %v67_v0  ;;  %v98_v4 = vld [vmem:[%s697_s1 + $0x170] sm:$0xff]  ;;  %v97_v7 = vld [vmem:[%s697_s1 + $0x168] sm:$0xff] }
   0x3   :  { %153 = vmatpush.msra.mxu2 %v99_v1  ;;  %v83_v3 = vld [vmem:[%s697_s1 + $0xf8] sm:$0xff]  ;;  %v82_v6 = vld [vmem:[%s697_s1 + $0xf0] sm:$0xff]  ;;  %v81_v8 = vld [vmem:[%s697_s1 + $0xe8] sm:$0xff] }
   0x4   :  { %133 = vmatpush.msra.mxu1 %v83_v3  ;;  %114 = vmatpush.msra.mxu0 %v66_v2  ;;  %v64_v9 = vld [vmem:[%s697_s1 + $0x60] sm:$0xff]  ;;  %v63_v12 = vld [vmem:[%s697_s1 + $0x58] sm:$0xff]  ;;  %v62_v15 = vld [vmem:[%s697_s1 + $0x50] sm:$0xff] }
   0x5   :  { %154 = vmatpush.msra.mxu2 %v98_v4  ;;  %v96_v10 = vld [vmem:[%s697_s1 + $0x160] sm:$0xff]  ;;  %v95_v13 = vld [vmem:[%s697_s1 + $0x158] sm:$0xff]  ;;  %v94_v16 = vld [vmem:[%s697_s1 + $0x150] sm:$0xff] }
   0x6   :  { %134 = vmatpush.msra.mxu1 %v82_v6  ;;  %115 = vmatpush.msra.mxu0 %v65_v5  ;;  %v80_v11 = vld [vmem:[%s697_s1 + $0xe0] sm:$0xff]  ;;  %v79_v14 = vld [vmem:[%s697_s1 + $0xd8] sm:$0xff]  ;;  %v78_v17 = vld [vmem:[%s697_s1 + $0xd0] sm:$0xff] }
   0x7   :  { %155 = vmatpush.msra.mxu2 %v97_v7  ;;  %v61_v18 = vld [vmem:[%s697_s1 + $0x48] sm:$0xff]  ;;  %v60_v21 = vld [vmem:[%s697_s1 + $0x40] sm:$0xff]  ;;  %v59_v24 = vld [vmem:[%s697_s1 + $0x38] sm:$0xff] }
   0x8   :  { %135 = vmatpush.msra.mxu1 %v81_v8  ;;  %116 = vmatpush.msra.mxu0 %v64_v9  ;;  %v93_v19 = vld [vmem:[%s697_s1 + $0x148] sm:$0xff]  ;;  %v92_v22 = vld [vmem:[%s697_s1 + $0x140] sm:$0xff]  ;;  %v91_v25 = vld [vmem:[%s697_s1 + $0x138] sm:$0xff] }
   0x9   :  { %156 = vmatpush.msra.mxu2 %v96_v10  ;;  %v77_v20 = vld [vmem:[%s697_s1 + $0xc8] sm:$0xff]  ;;  %v76_v23 = vld [vmem:[%s697_s1 + $0xc0] sm:$0xff]  ;;  %v75_v26 = vld [vmem:[%s697_s1 + $0xb8] sm:$0xff] }
   0xa   :  { %136 = vmatpush.msra.mxu1 %v80_v11  ;;  %117 = vmatpush.msra.mxu0 %v63_v12  ;;  %v58_v27 = vld [vmem:[%s697_s1 + $0x30] sm:$0xff]  ;;  %v57_v30 = vld [vmem:[%s697_s1 + $0x28] sm:$0xff]  ;;  %v56_v33 = vld [vmem:[%s697_s1 + $0x20] sm:$0xff] }
   0xb   :  { %157 = vmatpush.msra.mxu2 %v95_v13  ;;  %v90_v28 = vld [vmem:[%s697_s1 + $0x130] sm:$0xff]  ;;  %v89_v31 = vld [vmem:[%s697_s1 + $0x128] sm:$0xff]  ;;  %v88_v34 = vld [vmem:[%s697_s1 + $0x120] sm:$0xff] }
   0xc   :  { %137 = vmatpush.msra.mxu1 %v79_v14  ;;  %118 = vmatpush.msra.mxu0 %v62_v15  ;;  %v74_v29 = vld [vmem:[%s697_s1 + $0xb0] sm:$0xff]  ;;  %v73_v32 = vld [vmem:[%s697_s1 + $0xa8] sm:$0xff]  ;;  %v72_v35 = vld [vmem:[%s697_s1 + $0xa0] sm:$0xff] }
   0xd   :  { %158 = vmatpush.msra.mxu2 %v94_v16  ;;  %v55_v36 = vld [vmem:[%s697_s1 + $0x18] sm:$0xff]  ;;  %v54_v39 = vld [vmem:[%s697_s1 + $0x10] sm:$0xff]  ;;  %v53_v42 = vld [vmem:[%s697_s1 + $0x8] sm:$0xff] }
   0xe   :  { %138 = vmatpush.msra.mxu1 %v78_v17  ;;  %119 = vmatpush.msra.mxu0 %v61_v18  ;;  %v87_v37 = vld [vmem:[%s697_s1 + $0x118] sm:$0xff]  ;;  %v86_v40 = vld [vmem:[%s697_s1 + $0x110] sm:$0xff]  ;;  %v85_v43 = vld [vmem:[%s697_s1 + $0x108] sm:$0xff] }
   0xf   :  { %159 = vmatpush.msra.mxu2 %v93_v19  ;;  %v71_v38 = vld [vmem:[%s697_s1 + $0x98] sm:$0xff]  ;;  %v70_v41 = vld [vmem:[%s697_s1 + $0x90] sm:$0xff]  ;;  %v69_v44 = vld [vmem:[%s697_s1 + $0x88] sm:$0xff] }
  0x10   :  { %139 = vmatpush.msra.mxu1 %v77_v20  ;;  %120 = vmatpush.msra.mxu0 %v60_v21  ;;  %v52_v45 = vld [vmem:[%s697_s1] sm:$0xff]  ;;  %v50_v48 = vld [vmem:[%s699_s0 + $0x10] sm:$0xff]  ;;  %v49_v51 = vld [vmem:[%s699_s0 + $0x8] sm:$0xff] }
  0x11   :  { %160 = vmatpush.msra.mxu2 %v92_v22  ;;  %v84_v46 = vld [vmem:[%s697_s1 + $0x100] sm:$0xff]  ;;  %v51_v52 = vld [vmem:[%s699_s0 + $0x18] sm:$0xff]  ;;  %v200_v53 = vld [vmem:[%s701_s3 + $0x30] sm:$0x3] }
  0x12   :  { %140 = vmatpush.msra.mxu1 %v76_v23  ;;  %121 = vmatpush.msra.mxu0 %v59_v24  ;;  %v48_v47 = vld [vmem:[%s699_s0] sm:$0xff]  ;;  %v199_v54 = vld [vmem:[%s701_s3 + $0x28] sm:$0xff]  ;;  %v197_v56 = vld [vmem:[%s701_s3 + $0x18] sm:$0xff] }
  0x13   :  { %161 = vmatpush.msra.mxu2 %v91_v25  ;;  %v100_v49 = vld [vmem:[%s697_s1 + $0x180] sm:$0x3f]  ;;  %347 = vmatpush.msk.msra.mxu3 %vm209_vm2, %v200_v53  ;;  %v196_v57 = vld [vmem:[%s701_s3 + $0x10] sm:$0xff]  ;;  %v195_v58 = vld [vmem:[%s701_s3 + $0x8] sm:$0xff] }
  0x14   :  { %141 = vmatpush.msra.mxu1 %v75_v26  ;;  %122 = vmatpush.msra.mxu0 %v58_v27  ;;  %v68_v50 = vld [vmem:[%s697_s1 + $0x80] sm:$0xff]  ;;  %v240_v60 = vld [vmem:[%s702_s5 + $0x30] sm:$0x3]  ;;  %v239_v61 = vld [vmem:[%s702_s5 + $0x28] sm:$0xff] }
  0x15   :  { %162 = vmatpush.msra.mxu2 %v90_v28  ;;  %223 = vmatpush.msra.mxu3 %v199_v54  ;;  %v198_v55 = vld [vmem:[%s701_s3 + $0x20] sm:$0xff]  ;;  %v237_v63 = vld [vmem:[%s702_s5 + $0x18] sm:$0xff]  ;;  %v236_v10 = vld [vmem:[%s702_s5 + $0x10] sm:$0xff] }
  0x16   :  { %142 = vmatpush.msra.mxu1 %v74_v29  ;;  %123 = vmatpush.msra.mxu0 %v57_v30  ;;  %v194_v59 = vld [vmem:[%s701_s3] sm:$0xff]  ;;  %v235_v11 = vld [vmem:[%s702_s5 + $0x8] sm:$0xff]  ;;  %v278_v13 = vld [vmem:[%s704_s7 + $0x30] sm:$0x3] }
  0x17   :  { %163 = vmatpush.msra.mxu2 %v89_v31  ;;  %224 = vmatpush.msra.mxu3 %v198_v55  ;;  %v238_v62 = vld [vmem:[%s702_s5 + $0x20] sm:$0xff]  ;;  %v277_v14 = vld [vmem:[%s704_s7 + $0x28] sm:$0xff]  ;;  %v275_v16 = vld [vmem:[%s704_s7 + $0x18] sm:$0xff] }
  0x18   :  { %143 = vmatpush.msra.mxu1 %v73_v32  ;;  %124 = vmatpush.msra.mxu0 %v56_v33  ;;  %v353_v0 = vld [vmem:[%s698_s2] ss:$0 sm:$0xff]  ;;  %v274_v21 = vld [vmem:[%s704_s7 + $0x10] sm:$0xff]  ;;  %v273_v22 = vld [vmem:[%s704_s7 + $0x8] sm:$0xff] }
  0x19   :  { %164 = vmatpush.msra.mxu2 %v88_v34  ;;  %225 = vmatpush.msra.mxu3 %v197_v56  ;;  %v234_v12 = vld [vmem:[%s702_s5] sm:$0xff] }
  0x1a   :  { %144 = vmatpush.msra.mxu1 %v72_v35  ;;  %125 = vmatpush.msra.mxu0 %v55_v36  ;;  %v276_v15 = vld [vmem:[%s704_s7 + $0x20] sm:$0xff] }
  0x1b   :  { %165 = vmatpush.msra.mxu2 %v87_v37  ;;  %226 = vmatpush.msra.mxu3 %v196_v57  ;;  %v354_v17 = vld [vmem:[%s700_s4] ss:$0 sm:$0xff] }
  0x1c   :  { %145 = vmatpush.msra.mxu1 %v71_v38  ;;  %126 = vmatpush.msra.mxu0 %v54_v39  ;;  %v272_v23 = vld [vmem:[%s704_s7] sm:$0xff] }
  0x1d   :  { %166 = vmatpush.msra.mxu2 %v86_v40  ;;  %227 = vmatpush.msra.mxu3 %v195_v58  ;;  %v355_v24 = vld [vmem:[%s703_s6] ss:$0 sm:$0xff] }
  0x1e   :  { %146 = vmatpush.msra.mxu1 %v70_v41  ;;  %127 = vmatpush.msra.mxu0 %v53_v42  ;;  %v356_v28 = vld [vmem:[%s705_s8] ss:$0 sm:$0xff]  ;;  %v332_v42 = vstv %s710_s13 }
  0x1f   :  { %167 = vmatpush.msra.mxu2 %v85_v43  ;;  %228 = vmatpush.msra.mxu3 %v194_v59  ;;  %v357_v31 = vld [vmem:[%s706_s11] ss:$0 sm:$0xff] }
  0x20   :  { %147 = vmatpush.msra.mxu1 %v69_v44  ;;  %128 = vmatpush.msra.mxu0 %v52_v45  ;;  %v318_v32 = vld [vmem:[%s708_s9] sm:$0xff] }
  0x21   :  { %168 = vmatpush.msra.mxu2 %v84_v46  ;;  %129 = vmatmul.f32.vlgmr.msra.gmra.mxu0 %v48_v47  ;;  %v319_v33 = vld [vmem:[%s709_s10] sm:$0xff] }
  0x22   :  { %169 = vmatmul.f32.vlgmr.msra.gmra.mxu2 %v50_v48  ;;  %345 = vmatpush.msk.msrb.mxu0 %vm109_vm0, %v100_v49  ;;  %v320_v36 = vmul.f32 %v319_v33, %v318_v32  ;;  %v358_v37 = vld [vmem:[%s707_s12] ss:$0 sm:$0xff] }
  0x23   :  { %148 = vmatpush.msra.mxu1 %v68_v50  ;;  %349 = vmatpush.msk.msrb.mxu3 %vm209_vm2, %v240_v60 }
  0x24   :  { %149 = vmatmul.f32.vlgmr.msra.gmra.mxu1 %v49_v51  ;;  %v325_v39 = vmul.f32 %v358_v37, %v320_v36 }
  0x25   :  { %261 = vmatpush.msrb.mxu3 %v239_v61 }
  0x26   :  { %v327_v40 = vsel %vm326_vm4, %v325_v39, 0.0 }
  0x27   :  { %262 = vmatpush.msrb.mxu3 %v238_v62 }
  0x29   :  { %346 = vmatmul.msk.f32.vlgmr.msrb.gmra.mxu0 %vm105_vm1, %v51_v52  ;;  %263 = vmatpush.msrb.mxu3 %v237_v63 }
  0x2b   :  { %264 = vmatpush.msrb.mxu3 %v236_v10 }
  0x2d   :  { %265 = vmatpush.msrb.mxu3 %v235_v11 }
  0x2f   :  { %266 = vmatpush.msrb.mxu3 %v234_v12 }
  0x9e   :  { %v130_v1 = vpop.f32.mrf.mxu0 }
  0x9f   :  { %v131_v2 = vadd.f32 %v353_v0, %v130_v1 }
  0xa1   :  { %v150_v3 = vpop.f32.mrf.mxu1 }
  0xa2   :  { %v151_v4 = vadd.f32 %v150_v3, %v131_v2 }
  0xa5   :  { %v170_v5 = vpop.f32.mrf.mxu2 }
  0xa6   :  { %v171_v6 = vadd.f32 %v170_v5, %v151_v4  ;;  %v190_v7 = vpop.f32.mrf.mxu0 }
  0xa8   :  { %v191_v8 = vadd.f32 %v190_v7, %v171_v6 }
  0xaa   :  { %v193_v9 = vmax.f32 %v191_v8, 0.0 }
  0xac   :  { %348 = vmatmul.msk.f32.vlgmr.msra.gmra.mxu3 %vm205_vm3, %v193_v9 }
  0xad   :  { %351 = vmatpush.msk.msra.mxu3 %vm209_vm2, %v278_v13 }
  0xaf   :  { %299 = vmatpush.msra.mxu3 %v277_v14 }
  0xb1   :  { %300 = vmatpush.msra.mxu3 %v276_v15 }
  0xb3   :  { %301 = vmatpush.msra.mxu3 %v275_v16 }
  0xb5   :  { %302 = vmatpush.msra.mxu3 %v274_v21 }
  0xb7   :  { %303 = vmatpush.msra.mxu3 %v273_v22 }
  0xb9   :  { %304 = vmatpush.msra.mxu3 %v272_v23 }
 0x12f   :  { %v230_v18 = vpop.f32.mrf.mxu3 }
 0x130   :  { %v231_v19 = vadd.f32 %v354_v17, %v230_v18 }
 0x132   :  { %v233_v20 = vmax.f32 %v231_v19, 0.0 }
 0x134   :  { %350 = vmatmul.msk.f32.vlgmr.msrb.gmra.mxu3 %vm205_vm3, %v233_v20 }
 0x1b7   :  { %v268_v25 = vpop.f32.mrf.mxu3 }
 0x1b8   :  { %v269_v26 = vadd.f32 %v355_v24, %v268_v25 }
 0x1ba   :  { %v271_v27 = vmax.f32 %v269_v26, 0.0 }
 0x1bc   :  { %352 = vmatmul.msk.f32.vlgmr.msra.gmra.mxu3 %vm205_vm3, %v271_v27 }
 0x23f   :  { %v306_v29 = vpop.f32.mrf.mxu3 }
 0x240   :  { %v307_v30 = vadd.f32 %v356_v28, %v306_v29 }
 0x242   :  { %v309_v34 = vmax.f32 %v307_v30, 0.0 }
 0x244   :  { %v314_v35 = vmul.f32 %v357_v31, %v309_v34 }
 0x246   :  { %v315_v38 = vsel %vm205_vm3, %v314_v35, 0.0 }
 0x247   :  { %316 = vadd.xlane.f32.xlu0 %v315_v38 }
 0x24f   :  { %328 = vadd.xlane.f32.xlu0 %v327_v40 }
 0x2ba   :  { %v317_v41 = vpop.xlane.xlu0 %316 }
 0x2c2   :  { %v329_v43 = vpop.xlane.xlu0 %328 }
 0x2c3   :  { %v330_v44 = vadd.f32 %v329_v43, %v317_v41 }
 0x2c5   :  { %v333_v45 = vadd.f32 %v332_v42, %v330_v44 }
 0x2c7   :  { %v334_v46 = vsub.f32 0.0, %v333_v45 }
 0x2c9   :  { %v335_v47 = vmul.f32 1.442695, %v334_v46 }
 0x2cb   :  { %359 = vpow2.f32 %v335_v47 }
 0x2d1   :  { %v360_v48 = vpop.eup %359 }
 0x2d2   :  { %v337_v49 = vadd.f32 1.0, %v360_v48 }
 0x2d4   :  { %361 = vrcp.f32 %v337_v49 }
 0x2da   :  { %v362_v50 = vpop.eup %361 }
 0x2db   :  { %340 = vst.msk [vmem:[%s711_s14] sm:$0xff] %vm339_vm5, %v362_v50 }

</bundles_post_ra>
